<compile_context>
chip_gen: v7x
topology: tpu7x:2x2x1
jax: 0.10.0
libtpu: 0.0.40
codegen_flags: <defaults>
</compile_context>

<pallas_src>
import numpy as np
import jax
import jax.numpy as jnp
from jax.experimental import pallas as pl
from jax.experimental.pallas import tpu as pltpu


# ----------------------------------------------------------------------------
# Host-side construction of the banded operators (mirrors the PyTorch module).
# ----------------------------------------------------------------------------
def _gaussian_1d(scale):
    """1-D Gaussian exactly as AntiAliasInterpolation2d.__init__, normalized so
    that outer(g, g) equals the module's normalized 2-D kernel."""
    sigma = (1.0 / scale - 1.0) / 2.0
    ks = 2 * round(sigma * 4) + 1
    ax = np.arange(ks, dtype=np.float64)
    mean = (ks - 1) / 2.0
    g = np.exp(-((ax - mean) ** 2) / (2.0 * sigma ** 2))
    g = g / g.sum()            # outer(g, g) == k2 / k2.sum()
    return g, ks


def _band_matrix(size_in, scale):
    """Banded operator folding zero-pad + 1-D blur + ::s subsample on one axis.

    B[o, o*s - ka + i] = g[i] for in-range columns (out-of-range == zero pad).
    Shape: (ceil(size_in / s), size_in).
    """
    g, ks = _gaussian_1d(scale)
    s = int(1.0 / scale)       # matches the module's int(1/scale)
    ka = ks // 2
    size_out = -(-size_in // s)
    B = np.zeros((size_out, size_in), dtype=np.float64)
    for o in range(size_out):
        base = o * s - ka
        for i in range(ks):
            col = base + i
            if 0 <= col < size_in:
                B[o, col] = g[i]
    return B.astype(np.float32)


# ----------------------------------------------------------------------------
# In-kernel helpers: ~f32-accurate matmul from 3 native bf16 MXU passes.
# (Mosaic's dot lowering only supports Precision.DEFAULT / HIGHEST, so the
#  review's "use Precision.HIGH (bf16_3x)" is implemented by hand.)
# ----------------------------------------------------------------------------
def _split_bf16(a):
    hi = a.astype(jnp.bfloat16)
    lo = (a - hi.astype(jnp.float32)).astype(jnp.bfloat16)
    return hi, lo


def _dot3(a_hi, a_lo, b_hi, b_lo):
    f32 = jnp.float32
    return (jnp.dot(a_hi, b_hi, preferred_element_type=f32)
            + jnp.dot(a_lo, b_hi, preferred_element_type=f32)
            + jnp.dot(a_hi, b_lo, preferred_element_type=f32))


# ----------------------------------------------------------------------------
# Kernel
# ----------------------------------------------------------------------------
def _make_pyramid_kernel(NB, C, H, W, level_dims, col_off):
    """Refs: [BhT_all, Bv_0, ..., Bv_{L-1}, x, out_0, ..., out_{L-1}]."""
    L = len(level_dims)

    def kernel(*refs):
        bht_ref = refs[0]
        bv_refs = refs[1:1 + L]
        x_ref = refs[1 + L]
        out_refs = refs[2 + L:]

        # ---- Horizontal pass: fold batch+channel+row into M -> one fat
        #      MXU matmul against the level-stacked (W, sum_Wo) operator. ----
        x2 = x_ref[...].astype(jnp.float32).reshape(NB * C * H, W)
        x_hi, x_lo = _split_bf16(x2)
        bh_hi, bh_lo = _split_bf16(bht_ref[...].astype(jnp.float32))
        u = _dot3(x_hi, x_lo, bh_hi, bh_lo)          # (NB*C*H, sum_Wo) f32
        u_hi, u_lo = _split_bf16(u)

        # ---- Vertical pass: per level / image / channel banded matmul. ----
        for l in range(L):
            Ho, Wo = level_dims[l]
            c0 = col_off[l]
            # Point-of-use load of this level's operator (short live range).
            bv_hi, bv_lo = _split_bf16(bv_refs[l][...].astype(jnp.float32))
            for n in range(NB):
                for c in range(C):
                    r0 = (n * C + c) * H
                    o = _dot3(bv_hi, bv_lo,
                              u_hi[r0:r0 + H, c0:c0 + Wo],
                              u_lo[r0:r0 + H, c0:c0 + Wo])
                    out_refs[l][n, c] = o.astype(out_refs[l].dtype)

    return kernel


# ----------------------------------------------------------------------------
# Wrapper
# ----------------------------------------------------------------------------
def _pick_block_batch(n_batch, per_elem_bytes, budget_bytes=3 * 2**20):
    """Largest NB dividing N that fits the budget and keeps >= 2 grid steps
    (so v7x's second TensorCore / the software pipeline still get work)."""
    best = 1
    for nb in range(1, n_batch + 1):
        if n_batch % nb:
            continue
        if nb * per_elem_bytes > budget_bytes:
            break
        if nb == 1 or n_batch // nb >= 2:
            best = nb
    return best


def pyramid_downsample(x, scales):
    """All non-unity pyramid levels in a single pallas_call. Returns a list."""
    N, C, H, W = x.shape

    bv_list, bht_cols, level_dims = [], [], []
    for scale in scales:
        Bv = _band_matrix(H, scale)            # (Ho, H)
        Bh = _band_matrix(W, scale)            # (Wo, W)
        bv_list.append(Bv)
        bht_cols.append(Bh.T)                  # (W, Wo)
        level_dims.append((Bv.shape[0], Bh.shape[0]))
    bht_all = np.concatenate(bht_cols, axis=1)             # (W, sum_Wo)
    sum_wo = bht_all.shape[1]
    col_off = np.cumsum([0] + [wo for _, wo in level_dims])[:-1].tolist()

    esize = x.dtype.itemsize
    per_elem = C * H * W * esize + sum(C * ho * wo * esize for ho, wo in level_dims)
    NB = _pick_block_batch(N, per_elem)

    # Explicit VMEM budget: double-buffered pipeline blocks + the f32/bf16
    # working copies of the input block and the intermediate u.
    mats_bytes = bht_all.nbytes + sum(b.nbytes for b in bv_list)
    blk_bytes = NB * per_elem
    u_bytes = NB * C * H * sum_wo * 4
    need = 2 * (blk_bytes + mats_bytes) + 3 * NB * C * H * W * 4 + 3 * u_bytes
    vmem_limit = int(min(max(2 * need, 16 * 2**20), 64 * 2**20))

    # Inputs: constant index_maps on the tiny operators -> Pallas skips the
    # re-copy between consecutive grid steps; x is streamed once per block.
    in_specs = [pl.BlockSpec((W, sum_wo), lambda n: (0, 0))]
    args = [jnp.asarray(bht_all)]
    for Bv, (Ho, _) in zip(bv_list, level_dims):
        in_specs.append(pl.BlockSpec((Ho, H), lambda n: (0, 0)))
        args.append(jnp.asarray(Bv))
    in_specs.append(pl.BlockSpec((NB, C, H, W), lambda n: (n, 0, 0, 0)))
    args.append(x)

    out_shapes = tuple(jax.ShapeDtypeStruct((N, C, ho, wo), x.dtype)
                       for ho, wo in level_dims)
    out_specs = tuple(pl.BlockSpec((NB, C, ho, wo), lambda n: (n, 0, 0, 0))
                      for ho, wo in level_dims)

    outs = pl.pallas_call(
        _make_pyramid_kernel(NB, C, H, W, level_dims, col_off),
        out_shape=out_shapes,
        grid=(N // NB,),
        in_specs=in_specs,
        out_specs=out_specs,
        compiler_params=pltpu.CompilerParams(
            dimension_semantics=("parallel",),
            vmem_limit_bytes=vmem_limit),
    )(*args)
    return list(outs)


class ImagePyramide:
    """JAX/Pallas mirror of modules.model.ImagePyramide."""

    def __init__(self, scales, num_channels):
        self.scales = list(scales)
        self.num_channels = num_channels

    def __call__(self, x):
        blur_scales = [s for s in self.scales if float(s) != 1.0]
        downs = pyramid_downsample(x, blur_scales) if blur_scales else []
        out_dict = {}
        for scale in self.scales:
            key = 'prediction_' + str(scale).replace('.', '-').replace('-', '.')
            if float(scale) == 1.0:
                out_dict[key] = x               # AntiAliasInterpolation2d is identity
            else:
                out_dict[key] = downs[blur_scales.index(scale)]
        return out_dict


# ----------------------------------------------------------------------------
# Host reference + self-test
# ----------------------------------------------------------------------------
def _reference_np(x_np, scale):
    """float64 host NumPy reference mirroring AntiAliasInterpolation2d.forward."""
    if float(scale) == 1.0:
        return x_np.astype(np.float64)
    g, ks = _gaussian_1d(scale)
    k2 = np.outer(g, g)
    s = int(1.0 / scale)
    ka = ks // 2
    N, C, H, W = x_np.shape
    xp = np.pad(x_np.astype(np.float64), ((0, 0), (0, 0), (ka, ka), (ka, ka)))
    out = np.zeros((N, C, H, W), dtype=np.float64)
    for i in range(ks):
        for j in range(ks):
            out += k2[i, j] * xp[:, :, i:i + H, j:j + W]
    return out[:, :, ::s, ::s]


if __name__ == "__main__":
    key = jax.random.PRNGKey(0)
    N, C, H, W = 2, 4, 16, 16
    x = jax.random.normal(key, (N, C, H, W), dtype=jnp.float32)

    scales = [1, 0.5, 0.25]
    pyramide = ImagePyramide(scales, num_channels=C)
    out = pyramide(x)
    for v in out.values():
        jax.block_until_ready(v)

    x_np = np.asarray(x, dtype=np.float64)
    for scale in scales:
        name = 'prediction_' + str(scale).replace('.', '-').replace('-', '.')
        got = np.asarray(out[name], dtype=np.float64)
        ref = _reference_np(x_np, scale)
        assert out[name].dtype == x.dtype, name
        assert got.shape == ref.shape, (name, got.shape, ref.shape)
        err = float(np.max(np.abs(got - ref)))
        # bf16_3x (hi/lo split) keeps the error well below 1e-4 absolute.
        assert err < 1e-4, (name, err)

    print("KERNEL_OK")
</pallas_src>

<mosaic_0001>
module attributes {stable_mosaic.version = 11 : i64} {
  func.func @kernel(%arg0: i32, %arg1: memref<16x12xf32, #tpu.memory_space<vmem>>, %arg2: memref<8x16xf32, #tpu.memory_space<vmem>>, %arg3: memref<4x16xf32, #tpu.memory_space<vmem>>, %arg4: memref<1x4x16x16xf32, #tpu.memory_space<vmem>>, %arg5: memref<1x4x8x8xf32, #tpu.memory_space<vmem>>, %arg6: memref<1x4x4x4xf32, #tpu.memory_space<vmem>>) attributes {dimension_semantics = [#tpu.dimension_semantics<parallel>], iteration_bounds = array<i64: 2>, scalar_prefetch = 0 : i64, scratch_operands = 0 : i64, tpu.core_type = #tpu.core_type<tc>, window_params = [{pipeline_mode = #tpu.pipeline_mode<synchronous>, transform_indices = @transform_0, window_bounds = array<i64: 16, 12>}, {pipeline_mode = #tpu.pipeline_mode<synchronous>, transform_indices = @transform_1, window_bounds = array<i64: 8, 16>}, {pipeline_mode = #tpu.pipeline_mode<synchronous>, transform_indices = @transform_2, window_bounds = array<i64: 4, 16>}, {transform_indices = @transform_3, window_bounds = array<i64: 1, 4, 16, 16>}, {transform_indices = @transform_4, window_bounds = array<i64: 1, 4, 8, 8>}, {transform_indices = @transform_5, window_bounds = array<i64: 1, 4, 4, 4>}]} {
    %c0 = arith.constant 0 : index
    %c0_0 = arith.constant 0 : index
    %c0_1 = arith.constant 0 : index
    %c0_2 = arith.constant 0 : index
    %0 = vector.load %arg4[%c0, %c0_0, %c0_1, %c0_2] : memref<1x4x16x16xf32, #tpu.memory_space<vmem>>, vector<1x4x16x16xf32>
    %1 = vector.shape_cast %0 : vector<1x4x16x16xf32> to vector<64x16xf32>
    %2 = arith.truncf %1 : vector<64x16xf32> to vector<64x16xbf16>
    %3 = arith.extf %2 : vector<64x16xbf16> to vector<64x16xf32>
    %4 = arith.subf %1, %3 : vector<64x16xf32>
    %5 = arith.truncf %4 : vector<64x16xf32> to vector<64x16xbf16>
    %c0_3 = arith.constant 0 : index
    %c0_4 = arith.constant 0 : index
    %6 = vector.load %arg1[%c0_3, %c0_4] : memref<16x12xf32, #tpu.memory_space<vmem>>, vector<16x12xf32>
    %7 = arith.truncf %6 : vector<16x12xf32> to vector<16x12xbf16>
    %8 = arith.extf %7 : vector<16x12xbf16> to vector<16x12xf32>
    %9 = arith.subf %6, %8 : vector<16x12xf32>
    %10 = arith.truncf %9 : vector<16x12xf32> to vector<16x12xbf16>
    %cst = arith.constant dense<0.000000e+00> : vector<64x12xf32>
    %11 = tpu.matmul %2, %7, %cst {dimension_numbers = #tpu.dot_dimension_numbers<[1], [0], [0], [1], [0, 0, 1, 1], [], []>} : vector<64x16xbf16>, vector<16x12xbf16>, vector<64x12xf32> -> vector<64x12xf32>
    %cst_5 = arith.constant dense<0.000000e+00> : vector<64x12xf32>
    %12 = tpu.matmul %5, %7, %cst_5 {dimension_numbers = #tpu.dot_dimension_numbers<[1], [0], [0], [1], [0, 0, 1, 1], [], []>} : vector<64x16xbf16>, vector<16x12xbf16>, vector<64x12xf32> -> vector<64x12xf32>
    %13 = arith.addf %11, %12 : vector<64x12xf32>
    %cst_6 = arith.constant dense<0.000000e+00> : vector<64x12xf32>
    %14 = tpu.matmul %2, %10, %cst_6 {dimension_numbers = #tpu.dot_dimension_numbers<[1], [0], [0], [1], [0, 0, 1, 1], [], []>} : vector<64x16xbf16>, vector<16x12xbf16>, vector<64x12xf32> -> vector<64x12xf32>
    %15 = arith.addf %13, %14 : vector<64x12xf32>
    %16 = arith.truncf %15 : vector<64x12xf32> to vector<64x12xbf16>
    %17 = arith.extf %16 : vector<64x12xbf16> to vector<64x12xf32>
    %18 = arith.subf %15, %17 : vector<64x12xf32>
    %19 = arith.truncf %18 : vector<64x12xf32> to vector<64x12xbf16>
    %c0_7 = arith.constant 0 : index
    %c0_8 = arith.constant 0 : index
    %20 = vector.load %arg2[%c0_7, %c0_8] : memref<8x16xf32, #tpu.memory_space<vmem>>, vector<8x16xf32>
    %21 = arith.truncf %20 : vector<8x16xf32> to vector<8x16xbf16>
    %22 = arith.extf %21 : vector<8x16xbf16> to vector<8x16xf32>
    %23 = arith.subf %20, %22 : vector<8x16xf32>
    %24 = arith.truncf %23 : vector<8x16xf32> to vector<8x16xbf16>
    %25 = vector.extract_strided_slice %16 {offsets = [0, 0], sizes = [16, 8], strides = [1, 1]} : vector<64x12xbf16> to vector<16x8xbf16>
    %26 = vector.extract_strided_slice %19 {offsets = [0, 0], sizes = [16, 8], strides = [1, 1]} : vector<64x12xbf16> to vector<16x8xbf16>
    %cst_9 = arith.constant dense<0.000000e+00> : vector<8x8xf32>
    %27 = tpu.matmul %21, %25, %cst_9 {dimension_numbers = #tpu.dot_dimension_numbers<[1], [0], [0], [1], [0, 0, 1, 1], [], []>} : vector<8x16xbf16>, vector<16x8xbf16>, vector<8x8xf32> -> vector<8x8xf32>
    %cst_10 = arith.constant dense<0.000000e+00> : vector<8x8xf32>
    %28 = tpu.matmul %24, %25, %cst_10 {dimension_numbers = #tpu.dot_dimension_numbers<[1], [0], [0], [1], [0, 0, 1, 1], [], []>} : vector<8x16xbf16>, vector<16x8xbf16>, vector<8x8xf32> -> vector<8x8xf32>
    %29 = arith.addf %27, %28 : vector<8x8xf32>
    %cst_11 = arith.constant dense<0.000000e+00> : vector<8x8xf32>
    %30 = tpu.matmul %21, %26, %cst_11 {dimension_numbers = #tpu.dot_dimension_numbers<[1], [0], [0], [1], [0, 0, 1, 1], [], []>} : vector<8x16xbf16>, vector<16x8xbf16>, vector<8x8xf32> -> vector<8x8xf32>
    %31 = arith.addf %29, %30 : vector<8x8xf32>
    %c0_12 = arith.constant 0 : index
    %c0_13 = arith.constant 0 : index
    %c0_14 = arith.constant 0 : index
    %c0_15 = arith.constant 0 : index
    %32 = vector.load %arg5[%c0_12, %c0_13, %c0_14, %c0_15] : memref<1x4x8x8xf32, #tpu.memory_space<vmem>>, vector<1x1x8x8xf32>
    %33 = vector.shape_cast %32 : vector<1x1x8x8xf32> to vector<8x8xf32>
    %34 = vector.shape_cast %31 : vector<8x8xf32> to vector<1x1x8x8xf32>
    tpu.vector_store %arg5[%c0_12, %c0_13, %c0_14, %c0_15], %34 {strides = array<i32>} : memref<1x4x8x8xf32, #tpu.memory_space<vmem>>, vector<1x1x8x8xf32>,
    %35 = vector.extract_strided_slice %16 {offsets = [16, 0], sizes = [16, 8], strides = [1, 1]} : vector<64x12xbf16> to vector<16x8xbf16>
    %36 = vector.extract_strided_slice %19 {offsets = [16, 0], sizes = [16, 8], strides = [1, 1]} : vector<64x12xbf16> to vector<16x8xbf16>
    %cst_16 = arith.constant dense<0.000000e+00> : vector<8x8xf32>
    %37 = tpu.matmul %21, %35, %cst_16 {dimension_numbers = #tpu.dot_dimension_numbers<[1], [0], [0], [1], [0, 0, 1, 1], [], []>} : vector<8x16xbf16>, vector<16x8xbf16>, vector<8x8xf32> -> vector<8x8xf32>
    %cst_17 = arith.constant dense<0.000000e+00> : vector<8x8xf32>
    %38 = tpu.matmul %24, %35, %cst_17 {dimension_numbers = #tpu.dot_dimension_numbers<[1], [0], [0], [1], [0, 0, 1, 1], [], []>} : vector<8x16xbf16>, vector<16x8xbf16>, vector<8x8xf32> -> vector<8x8xf32>
    %39 = arith.addf %37, %38 : vector<8x8xf32>
    %cst_18 = arith.constant dense<0.000000e+00> : vector<8x8xf32>
    %40 = tpu.matmul %21, %36, %cst_18 {dimension_numbers = #tpu.dot_dimension_numbers<[1], [0], [0], [1], [0, 0, 1, 1], [], []>} : vector<8x16xbf16>, vector<16x8xbf16>, vector<8x8xf32> -> vector<8x8xf32>
    %41 = arith.addf %39, %40 : vector<8x8xf32>
    %c0_19 = arith.constant 0 : index
    %c1 = arith.constant 1 : index
    %c0_20 = arith.constant 0 : index
    %c0_21 = arith.constant 0 : index
    %42 = vector.load %arg5[%c0_19, %c1, %c0_20, %c0_21] : memref<1x4x8x8xf32, #tpu.memory_space<vmem>>, vector<1x1x8x8xf32>
    %43 = vector.shape_cast %42 : vector<1x1x8x8xf32> to vector<8x8xf32>
    %44 = vector.shape_cast %41 : vector<8x8xf32> to vector<1x1x8x8xf32>
    tpu.vector_store %arg5[%c0_19, %c1, %c0_20, %c0_21], %44 {strides = array<i32>} : memref<1x4x8x8xf32, #tpu.memory_space<vmem>>, vector<1x1x8x8xf32>,
    %45 = vector.extract_strided_slice %16 {offsets = [32, 0], sizes = [16, 8], strides = [1, 1]} : vector<64x12xbf16> to vector<16x8xbf16>
    %46 = vector.extract_strided_slice %19 {offsets = [32, 0], sizes = [16, 8], strides = [1, 1]} : vector<64x12xbf16> to vector<16x8xbf16>
    %cst_22 = arith.constant dense<0.000000e+00> : vector<8x8xf32>
    %47 = tpu.matmul %21, %45, %cst_22 {dimension_numbers = #tpu.dot_dimension_numbers<[1], [0], [0], [1], [0, 0, 1, 1], [], []>} : vector<8x16xbf16>, vector<16x8xbf16>, vector<8x8xf32> -> vector<8x8xf32>
    %cst_23 = arith.constant dense<0.000000e+00> : vector<8x8xf32>
    %48 = tpu.matmul %24, %45, %cst_23 {dimension_numbers = #tpu.dot_dimension_numbers<[1], [0], [0], [1], [0, 0, 1, 1], [], []>} : vector<8x16xbf16>, vector<16x8xbf16>, vector<8x8xf32> -> vector<8x8xf32>
    %49 = arith.addf %47, %48 : vector<8x8xf32>
    %cst_24 = arith.constant dense<0.000000e+00> : vector<8x8xf32>
    %50 = tpu.matmul %21, %46, %cst_24 {dimension_numbers = #tpu.dot_dimension_numbers<[1], [0], [0], [1], [0, 0, 1, 1], [], []>} : vector<8x16xbf16>, vector<16x8xbf16>, vector<8x8xf32> -> vector<8x8xf32>
    %51 = arith.addf %49, %50 : vector<8x8xf32>
    %c0_25 = arith.constant 0 : index
    %c2 = arith.constant 2 : index
    %c0_26 = arith.constant 0 : index
    %c0_27 = arith.constant 0 : index
    %52 = vector.load %arg5[%c0_25, %c2, %c0_26, %c0_27] : memref<1x4x8x8xf32, #tpu.memory_space<vmem>>, vector<1x1x8x8xf32>
    %53 = vector.shape_cast %52 : vector<1x1x8x8xf32> to vector<8x8xf32>
    %54 = vector.shape_cast %51 : vector<8x8xf32> to vector<1x1x8x8xf32>
    tpu.vector_store %arg5[%c0_25, %c2, %c0_26, %c0_27], %54 {strides = array<i32>} : memref<1x4x8x8xf32, #tpu.memory_space<vmem>>, vector<1x1x8x8xf32>,
    %55 = vector.extract_strided_slice %16 {offsets = [48, 0], sizes = [16, 8], strides = [1, 1]} : vector<64x12xbf16> to vector<16x8xbf16>
    %56 = vector.extract_strided_slice %19 {offsets = [48, 0], sizes = [16, 8], strides = [1, 1]} : vector<64x12xbf16> to vector<16x8xbf16>
    %cst_28 = arith.constant dense<0.000000e+00> : vector<8x8xf32>
    %57 = tpu.matmul %21, %55, %cst_28 {dimension_numbers = #tpu.dot_dimension_numbers<[1], [0], [0], [1], [0, 0, 1, 1], [], []>} : vector<8x16xbf16>, vector<16x8xbf16>, vector<8x8xf32> -> vector<8x8xf32>
    %cst_29 = arith.constant dense<0.000000e+00> : vector<8x8xf32>
    %58 = tpu.matmul %24, %55, %cst_29 {dimension_numbers = #tpu.dot_dimension_numbers<[1], [0], [0], [1], [0, 0, 1, 1], [], []>} : vector<8x16xbf16>, vector<16x8xbf16>, vector<8x8xf32> -> vector<8x8xf32>
    %59 = arith.addf %57, %58 : vector<8x8xf32>
    %cst_30 = arith.constant dense<0.000000e+00> : vector<8x8xf32>
    %60 = tpu.matmul %21, %56, %cst_30 {dimension_numbers = #tpu.dot_dimension_numbers<[1], [0], [0], [1], [0, 0, 1, 1], [], []>} : vector<8x16xbf16>, vector<16x8xbf16>, vector<8x8xf32> -> vector<8x8xf32>
    %61 = arith.addf %59, %60 : vector<8x8xf32>
    %c0_31 = arith.constant 0 : index
    %c3 = arith.constant 3 : index
    %c0_32 = arith.constant 0 : index
    %c0_33 = arith.constant 0 : index
    %62 = vector.load %arg5[%c0_31, %c3, %c0_32, %c0_33] : memref<1x4x8x8xf32, #tpu.memory_space<vmem>>, vector<1x1x8x8xf32>
    %63 = vector.shape_cast %62 : vector<1x1x8x8xf32> to vector<8x8xf32>
    %64 = vector.shape_cast %61 : vector<8x8xf32> to vector<1x1x8x8xf32>
    tpu.vector_store %arg5[%c0_31, %c3, %c0_32, %c0_33], %64 {strides = array<i32>} : memref<1x4x8x8xf32, #tpu.memory_space<vmem>>, vector<1x1x8x8xf32>,
    %c0_34 = arith.constant 0 : index
    %c0_35 = arith.constant 0 : index
    %65 = vector.load %arg3[%c0_34, %c0_35] : memref<4x16xf32, #tpu.memory_space<vmem>>, vector<4x16xf32>
    %66 = arith.truncf %65 : vector<4x16xf32> to vector<4x16xbf16>
    %67 = arith.extf %66 : vector<4x16xbf16> to vector<4x16xf32>
    %68 = arith.subf %65, %67 : vector<4x16xf32>
    %69 = arith.truncf %68 : vector<4x16xf32> to vector<4x16xbf16>
    %70 = vector.extract_strided_slice %16 {offsets = [0, 8], sizes = [16, 4], strides = [1, 1]} : vector<64x12xbf16> to vector<16x4xbf16>
    %71 = vector.extract_strided_slice %19 {offsets = [0, 8], sizes = [16, 4], strides = [1, 1]} : vector<64x12xbf16> to vector<16x4xbf16>
    %cst_36 = arith.constant dense<0.000000e+00> : vector<4x4xf32>
    %72 = tpu.matmul %66, %70, %cst_36 {dimension_numbers = #tpu.dot_dimension_numbers<[1], [0], [0], [1], [0, 0, 1, 1], [], []>} : vector<4x16xbf16>, vector<16x4xbf16>, vector<4x4xf32> -> vector<4x4xf32>
    %cst_37 = arith.constant dense<0.000000e+00> : vector<4x4xf32>
    %73 = tpu.matmul %69, %70, %cst_37 {dimension_numbers = #tpu.dot_dimension_numbers<[1], [0], [0], [1], [0, 0, 1, 1], [], []>} : vector<4x16xbf16>, vector<16x4xbf16>, vector<4x4xf32> -> vector<4x4xf32>
    %74 = arith.addf %72, %73 : vector<4x4xf32>
    %cst_38 = arith.constant dense<0.000000e+00> : vector<4x4xf32>
    %75 = tpu.matmul %66, %71, %cst_38 {dimension_numbers = #tpu.dot_dimension_numbers<[1], [0], [0], [1], [0, 0, 1, 1], [], []>} : vector<4x16xbf16>, vector<16x4xbf16>, vector<4x4xf32> -> vector<4x4xf32>
    %76 = arith.addf %74, %75 : vector<4x4xf32>
    %c0_39 = arith.constant 0 : index
    %c0_40 = arith.constant 0 : index
    %c0_41 = arith.constant 0 : index
    %c0_42 = arith.constant 0 : index
    %77 = vector.load %arg6[%c0_39, %c0_40, %c0_41, %c0_42] : memref<1x4x4x4xf32, #tpu.memory_space<vmem>>, vector<1x1x4x4xf32>
    %78 = vector.shape_cast %77 : vector<1x1x4x4xf32> to vector<4x4xf32>
    %79 = vector.shape_cast %76 : vector<4x4xf32> to vector<1x1x4x4xf32>
    tpu.vector_store %arg6[%c0_39, %c0_40, %c0_41, %c0_42], %79 {strides = array<i32>} : memref<1x4x4x4xf32, #tpu.memory_space<vmem>>, vector<1x1x4x4xf32>,
    %80 = vector.extract_strided_slice %16 {offsets = [16, 8], sizes = [16, 4], strides = [1, 1]} : vector<64x12xbf16> to vector<16x4xbf16>
    %81 = vector.extract_strided_slice %19 {offsets = [16, 8], sizes = [16, 4], strides = [1, 1]} : vector<64x12xbf16> to vector<16x4xbf16>
    %cst_43 = arith.constant dense<0.000000e+00> : vector<4x4xf32>
    %82 = tpu.matmul %66, %80, %cst_43 {dimension_numbers = #tpu.dot_dimension_numbers<[1], [0], [0], [1], [0, 0, 1, 1], [], []>} : vector<4x16xbf16>, vector<16x4xbf16>, vector<4x4xf32> -> vector<4x4xf32>
    %cst_44 = arith.constant dense<0.000000e+00> : vector<4x4xf32>
    %83 = tpu.matmul %69, %80, %cst_44 {dimension_numbers = #tpu.dot_dimension_numbers<[1], [0], [0], [1], [0, 0, 1, 1], [], []>} : vector<4x16xbf16>, vector<16x4xbf16>, vector<4x4xf32> -> vector<4x4xf32>
    %84 = arith.addf %82, %83 : vector<4x4xf32>
    %cst_45 = arith.constant dense<0.000000e+00> : vector<4x4xf32>
    %85 = tpu.matmul %66, %81, %cst_45 {dimension_numbers = #tpu.dot_dimension_numbers<[1], [0], [0], [1], [0, 0, 1, 1], [], []>} : vector<4x16xbf16>, vector<16x4xbf16>, vector<4x4xf32> -> vector<4x4xf32>
    %86 = arith.addf %84, %85 : vector<4x4xf32>
    %c0_46 = arith.constant 0 : index
    %c1_47 = arith.constant 1 : index
    %c0_48 = arith.constant 0 : index
    %c0_49 = arith.constant 0 : index
    %87 = vector.load %arg6[%c0_46, %c1_47, %c0_48, %c0_49] : memref<1x4x4x4xf32, #tpu.memory_space<vmem>>, vector<1x1x4x4xf32>
    %88 = vector.shape_cast %87 : vector<1x1x4x4xf32> to vector<4x4xf32>
    %89 = vector.shape_cast %86 : vector<4x4xf32> to vector<1x1x4x4xf32>
    tpu.vector_store %arg6[%c0_46, %c1_47, %c0_48, %c0_49], %89 {strides = array<i32>} : memref<1x4x4x4xf32, #tpu.memory_space<vmem>>, vector<1x1x4x4xf32>,
    %90 = vector.extract_strided_slice %16 {offsets = [32, 8], sizes = [16, 4], strides = [1, 1]} : vector<64x12xbf16> to vector<16x4xbf16>
    %91 = vector.extract_strided_slice %19 {offsets = [32, 8], sizes = [16, 4], strides = [1, 1]} : vector<64x12xbf16> to vector<16x4xbf16>
    %cst_50 = arith.constant dense<0.000000e+00> : vector<4x4xf32>
    %92 = tpu.matmul %66, %90, %cst_50 {dimension_numbers = #tpu.dot_dimension_numbers<[1], [0], [0], [1], [0, 0, 1, 1], [], []>} : vector<4x16xbf16>, vector<16x4xbf16>, vector<4x4xf32> -> vector<4x4xf32>
    %cst_51 = arith.constant dense<0.000000e+00> : vector<4x4xf32>
    %93 = tpu.matmul %69, %90, %cst_51 {dimension_numbers = #tpu.dot_dimension_numbers<[1], [0], [0], [1], [0, 0, 1, 1], [], []>} : vector<4x16xbf16>, vector<16x4xbf16>, vector<4x4xf32> -> vector<4x4xf32>
    %94 = arith.addf %92, %93 : vector<4x4xf32>
    %cst_52 = arith.constant dense<0.000000e+00> : vector<4x4xf32>
    %95 = tpu.matmul %66, %91, %cst_52 {dimension_numbers = #tpu.dot_dimension_numbers<[1], [0], [0], [1], [0, 0, 1, 1], [], []>} : vector<4x16xbf16>, vector<16x4xbf16>, vector<4x4xf32> -> vector<4x4xf32>
    %96 = arith.addf %94, %95 : vector<4x4xf32>
    %c0_53 = arith.constant 0 : index
    %c2_54 = arith.constant 2 : index
    %c0_55 = arith.constant 0 : index
    %c0_56 = arith.constant 0 : index
    %97 = vector.load %arg6[%c0_53, %c2_54, %c0_55, %c0_56] : memref<1x4x4x4xf32, #tpu.memory_space<vmem>>, vector<1x1x4x4xf32>
    %98 = vector.shape_cast %97 : vector<1x1x4x4xf32> to vector<4x4xf32>
    %99 = vector.shape_cast %96 : vector<4x4xf32> to vector<1x1x4x4xf32>
    tpu.vector_store %arg6[%c0_53, %c2_54, %c0_55, %c0_56], %99 {strides = array<i32>} : memref<1x4x4x4xf32, #tpu.memory_space<vmem>>, vector<1x1x4x4xf32>,
    %100 = vector.extract_strided_slice %16 {offsets = [48, 8], sizes = [16, 4], strides = [1, 1]} : vector<64x12xbf16> to vector<16x4xbf16>
    %101 = vector.extract_strided_slice %19 {offsets = [48, 8], sizes = [16, 4], strides = [1, 1]} : vector<64x12xbf16> to vector<16x4xbf16>
    %cst_57 = arith.constant dense<0.000000e+00> : vector<4x4xf32>
    %102 = tpu.matmul %66, %100, %cst_57 {dimension_numbers = #tpu.dot_dimension_numbers<[1], [0], [0], [1], [0, 0, 1, 1], [], []>} : vector<4x16xbf16>, vector<16x4xbf16>, vector<4x4xf32> -> vector<4x4xf32>
    %cst_58 = arith.constant dense<0.000000e+00> : vector<4x4xf32>
    %103 = tpu.matmul %69, %100, %cst_58 {dimension_numbers = #tpu.dot_dimension_numbers<[1], [0], [0], [1], [0, 0, 1, 1], [], []>} : vector<4x16xbf16>, vector<16x4xbf16>, vector<4x4xf32> -> vector<4x4xf32>
    %104 = arith.addf %102, %103 : vector<4x4xf32>
    %cst_59 = arith.constant dense<0.000000e+00> : vector<4x4xf32>
    %105 = tpu.matmul %66, %101, %cst_59 {dimension_numbers = #tpu.dot_dimension_numbers<[1], [0], [0], [1], [0, 0, 1, 1], [], []>} : vector<4x16xbf16>, vector<16x4xbf16>, vector<4x4xf32> -> vector<4x4xf32>
    %106 = arith.addf %104, %105 : vector<4x4xf32>
    %c0_60 = arith.constant 0 : index
    %c3_61 = arith.constant 3 : index
    %c0_62 = arith.constant 0 : index
    %c0_63 = arith.constant 0 : index
    %107 = vector.load %arg6[%c0_60, %c3_61, %c0_62, %c0_63] : memref<1x4x4x4xf32, #tpu.memory_space<vmem>>, vector<1x1x4x4xf32>
    %108 = vector.shape_cast %107 : vector<1x1x4x4xf32> to vector<4x4xf32>
    %109 = vector.shape_cast %106 : vector<4x4xf32> to vector<1x1x4x4xf32>
    tpu.vector_store %arg6[%c0_60, %c3_61, %c0_62, %c0_63], %109 {strides = array<i32>} : memref<1x4x4x4xf32, #tpu.memory_space<vmem>>, vector<1x1x4x4xf32>,
    return
  }
  func.func @transform_0(%arg0: i32) -> (i32, i32) {
    %c0_i32 = arith.constant 0 : i32
    %c0_i32_0 = arith.constant 0 : i32
    %c0_i32_1 = arith.constant 0 : i32
    return %c0_i32, %c0_i32_0 : i32, i32
  }
  func.func @transform_1(%arg0: i32) -> (i32, i32) {
    %c0_i32 = arith.constant 0 : i32
    %c0_i32_0 = arith.constant 0 : i32
    %c0_i32_1 = arith.constant 0 : i32
    return %c0_i32, %c0_i32_0 : i32, i32
  }
  func.func @transform_2(%arg0: i32) -> (i32, i32) {
    %c0_i32 = arith.constant 0 : i32
    %c0_i32_0 = arith.constant 0 : i32
    %c0_i32_1 = arith.constant 0 : i32
    return %c0_i32, %c0_i32_0 : i32, i32
  }
  func.func @transform_3(%arg0: i32) -> (i32, i32, i32, i32) {
    %c0_i32 = arith.constant 0 : i32
    %c0_i32_0 = arith.constant 0 : i32
    %c0_i32_1 = arith.constant 0 : i32
    %c0_i32_2 = arith.constant 0 : i32
    return %arg0, %c0_i32, %c0_i32_0, %c0_i32_1 : i32, i32, i32, i32
  }
  func.func @transform_4(%arg0: i32) -> (i32, i32, i32, i32) {
    %c0_i32 = arith.constant 0 : i32
    %c0_i32_0 = arith.constant 0 : i32
    %c0_i32_1 = arith.constant 0 : i32
    %c0_i32_2 = arith.constant 0 : i32
    return %arg0, %c0_i32, %c0_i32_0, %c0_i32_1 : i32, i32, i32, i32
  }
  func.func @transform_5(%arg0: i32) -> (i32, i32, i32, i32) {
    %c0_i32 = arith.constant 0 : i32
    %c0_i32_0 = arith.constant 0 : i32
    %c0_i32_1 = arith.constant 0 : i32
    %c0_i32_2 = arith.constant 0 : i32
    return %arg0, %c0_i32, %c0_i32_0, %c0_i32_1 : i32, i32, i32, i32
  }
}

</mosaic_0001>

<bundles_post_ra>
// kernel: tpu_custom_call.1
= control target key start
LH: loop header
LB: loop body
LE: loop exit
PB: predicated region body
PF: predicated region fallthrough
CT: control target
= control target key end

     0   :  { %11 = vsyncpa [#allocation3], 0  ;;  %s2894_s0 = inlined_call_operand.hbm [shape: f32[16,12], index: 0, kind: input, shape index: {}]   ;;  %s2895_s1 = inlined_call_operand.hbm [shape: f32[8,16], index: 1, kind: input, shape index: {}]   ;;  %s2896_s2 = inlined_call_operand.vmem [shape: f32[4,16], index: 2, kind: input, shape index: {}]   ;;  %s2897_s3 = inlined_call_operand.hbm [shape: f32[2,4,16,16], index: 3, kind: input, shape index: {}]   ;;  %s2898_s4 = inlined_call_operand.hbm [shape: f32[2,4,8,8], index: 4, kind: output, shape index: {0}]   ;;  %s2899_s5 = inlined_call_operand.hbm [shape: f32[2,4,4,4], index: 5, kind: output, shape index: {1}]  }
   0x1   :  { %12 = vsyncpa [#allocation6], 0 }
   0x2   :  { %13 = vsyncpa [#allocation4], 0 }
   0x3   :  { %15 = vsyncpa [#allocation4 + $0x1], 0 }
   0x4   :  { %16 = vsyncpa [#allocation10], 0 }
   0x5   :  { %18 = vsyncpa [#allocation10 + $0x1], 0  ;;  %s2472_s18 = smov 0   ;;  %s2474_s19 = smov 0  }
   0x6   :  { %s2476_s20 = smov 0   ;;  %s2478_s21 = smov 0  }
   0x7 LB: > { %s2493_s22 = sadd.s32 4294967295, %s2426_s21   ;;  %s1769_s23 = sadd.s32 4294967294, %s2426_s21   ;;  %s2426_s21 = sphi %s2478_s21, %s2929_s21   ;;  %s2422_s20 = sphi %s2476_s20, %s2928_s20   ;;  %s2418_s19 = sphi %s2474_s19, %s2927_s19   ;;  %s2414_s18 = sphi %s2472_s18, %s2926_s18  }
   0x8   : > { %s2497_s24 = sadd.s32 1, %s2426_s21   ;;  %s94_s25 = sadd.s32 1, %s2422_s20 }
   0x9   : > { %s91_s26 = ssub.s32 %s2426_s21, %s2497_s24  ;;  %p101_p0 = scmp.ne.s32.totalorder %s2422_s20, %s2418_s19 }
   0xa   : > { %p92_p1 = scmp.eq.s32.totalorder %s91_s26, 0  ;;  %p102_p2 = scmp.eq.s32.totalorder %s2426_s21, 0 }
   0xb   : > { %p107_p3 = scmp.ne.s32.totalorder %s2418_s19, %s2414_s18  ;;  %p2900_p4 = scmp.eq.s32.totalorder %s2493_s22, 0 }
   0xc   : > { %s2509_s27 = scalar_select %p92_p1, %s2422_s20, %s94_s25  }
   0xd   : > { %p2511_p5 = por %p102_p2, %p101_p0  ;;  %p2517_p6 = por %p2900_p4, %p107_p3 }
   0xe   : > { %p131_p7 = scmp.eq.s32.totalorder %s2493_s22, 1  ;;  %p137_p8 = scmp.eq.s32.totalorder %s1769_s23, 1 }
   0xf   : > { %s2906_s28 = scalar_select %p2511_p5, 1, 0 }
  0x10   : > { %s2907_s29 = scalar_select %p2517_p6, 1, 0 }
  0x11   : > { %p1770_p9 = scmp.ge.s32.totalorder %s2426_s21, 1  ;;  %p170_p10 = scmp.lt.s32.totalorder %s2426_s21, 3 }
  0x12   : > { %p2524_p11 = por %p131_p7, %p101_p0  ;;  %p2528_p12 = por %p137_p8, %p107_p3 }
  0x13   : > { %p2532_p13 = pnand %p1770_p9, %p170_p10  ;;  %s2428_s8 = smov [#allocation2]  }
  0x14   : > { %s2908_s30 = scalar_select %p2524_p11, 1, 0 }
  0x15   : > { %s2909_s6 = scalar_select %p2528_p12, 1, 0 }
  0x16   : > { %s2910_s7 = scalar_select %p2532_p13, 1, 0 }
  0x17   : > { %p2167_p1 = pneg %p2532_p13  ;;  %s182_s9 = sshll.u32 %s2428_s8, 4  ;;  %s183_s9 = int_to_ptr.vmem [resolvable:$true] %s182_s9 }
  0x18   : > { %s2429_s11 = smov [#allocation5]   ;;  %s2234_s15 = scalar_lea.hbm %s2894_s0, 256 }
  0x19   : > { %p2540_p2 = pnand %p2167_p1, %p2900_p4  ;;  %s196_s12 = sshll.u32 %s2429_s11, 4  ;;  %s197_s12 = int_to_ptr.vmem [resolvable:$true] %s196_s12 }
  0x1a   : > { %p2235_p7 = scmp.ne.s32.totalorder %s2894_s0, %s2234_s15  ;;  %p2241_p1 = scmp.lt.u32.totalorder %s2234_s15, %s2894_s0 }
  0x1b   : > { %p2236_p8 = pneg %p2540_p2 }
  0x1d   : > { %p2237_p9 = pnand %p2236_p8, %p2235_p7 }
  0x1f   : > { %p2238_p10 = pneg %p2237_p9 }
  0x21   : > { %p2243_p0 = pnand %p2241_p1, %p2238_p10 }
  0x23   : > { %2246 = shalt.err (!%p2243_p0)
}
  0x24   : > { %s2247_s26 = scalar_lea.vmem %s183_s9, 256  ;;  %p2255_p11 = scmp.lt.s32.totalorder %s183_s9, %s183_s9 }
  0x25   : > { %p2248_p4 = scmp.ne.s32.totalorder %s183_s9, %s2247_s26  ;;  %p2256_p6 = scmp.lt.s32.totalorder %s2247_s26, %s2247_s26 }
  0x27   : > { %p2250_p3 = pnand %p2248_p4, %p2236_p8  ;;  %p2257_p13 = por %p2256_p6, %p2255_p11 }
  0x29   : > { %p2251_p12 = pneg %p2250_p3 }
  0x2b   : > { %p2258_p5 = pnand %p2257_p13, %p2251_p12 }
  0x2d   : > { %2261 = shalt.err (!%p2258_p5)
}
  0x2e   : > { %s2905_s8 = smov 128   ;;  %s2431_s11 = smov 8  }
  0x2f   : > { %2170 = dma.hbm_to_vmem [thread:$0]  (!%p2540_p2), %s2894_s0, 256, %s183_s9, [#allocation3], %s2905_s8, %s2905_s8, %s2431_s11  }
  0x30   : > { %p2912_p4 = scmp.ne.s32.totalorder %s2906_s28, 0  ;;  %p2913_p0 = scmp.lt.s32.totalorder %s2426_s21, 2 }
  0x31   : > { %s2262_s23 = scalar_lea.hbm %s2895_s1, 128 }
  0x32   : > { %p2575_p3 = pnand %p2913_p0, %p2912_p4  ;;  %p2263_p5 = scmp.ne.s32.totalorder %s2895_s1, %s2262_s23 }
  0x33   : > { %p2269_p12 = scmp.lt.u32.totalorder %s2262_s23, %s2895_s1 }
  0x34   : > { %s2914_s15 = scalar_select %p2575_p3, 1, 0 }
  0x35   : > { %p2265_p6 = pnand %p2263_p5, %p2236_p8 }
  0x37   : > { %p2266_p11 = pneg %p2265_p6 }
  0x39   : > { %p2271_p13 = pnand %p2269_p12, %p2266_p11 }
  0x3b   : > { %2274 = shalt.err (!%p2271_p13)
}
  0x3c   : > { %s2275_s13 = scalar_lea.vmem %s197_s12, 128  ;;  %p2283_p1 = scmp.lt.s32.totalorder %s197_s12, %s197_s12 }
  0x3d   : > { %p2276_p7 = scmp.ne.s32.totalorder %s197_s12, %s2275_s13  ;;  %p2284_p4 = scmp.lt.s32.totalorder %s2275_s13, %s2275_s13 }
  0x3f   : > { %p2278_p9 = pnand %p2276_p7, %p2236_p8  ;;  %p2285_p0 = por %p2284_p4, %p2283_p1 }
  0x41   : > { %p2279_p10 = pneg %p2278_p9 }
  0x43   : > { %p2286_p3 = pnand %p2285_p0, %p2279_p10 }
  0x45   : > { %2289 = shalt.err (!%p2286_p3)
}
  0x46   : > { %2173 = dma.hbm_to_vmem [thread:$0]  (!%p2540_p2), %s2895_s1, 128, %s197_s12, [#allocation6]  }
  0x47   : > { %s210_s17 = sand.u32 1, %s2426_s21   ;;  %s212_s23 = sand.u32 1, %s2422_s20  }
  0x48   : > { %s1774_s25 = sshll.u32 %s212_s23, 6  ;;  %s1833_s26 = sshll.u32 %s2426_s21, 10 }
  0x49   : > { %s2605_s13 = scalar_lea.hbm %s2897_s3, %s1833_s26  ;;  %s214_s10 = scalar_lea.vmem [#allocation7], %s1774_s25 }
  0x4a   : > { %s221_s14 = sshll.u32 %s214_s10, 4  ;;  %s2609_s16 = scalar_lea.sflag [#allocation3], %s210_s17  ;;  %s2607_s14 = int_to_ptr.vmem [resolvable:$true] %s221_s14 }
  0x4b   : > { %s2290_s12 = scalar_lea.hbm %s2605_s13, 1024  ;;  %p2915_p8 = scmp.ne.s32.totalorder %s2914_s15, 0 }
  0x4c   : > { %p2291_p2 = scmp.ne.s32.totalorder %s2605_s13, %s2290_s12  ;;  %s2295_s9 = scalar_lea.hbm %s2897_s3, 2048 }
  0x4d   : > { %p2292_p3 = pneg %p2915_p8  ;;  %p2296_p11 = scmp.lt.u32.totalorder %s2605_s13, %s2897_s3 }
  0x4e   : > { %p2297_p12 = scmp.lt.u32.totalorder %s2295_s9, %s2290_s12  ;;  %p2299_p7 = scmp.lt.u32.totalorder %s2290_s12, %s2605_s13 }
  0x4f   : > { %p2293_p5 = pnand %p2292_p3, %p2291_p2 }
  0x50   : > { %p2298_p13 = por %p2297_p12, %p2296_p11 }
  0x51   : > { %p2294_p6 = pneg %p2293_p5 }
  0x52   : > { %p2300_p9 = por %p2299_p7, %p2298_p13 }
  0x54   : > { %p2301_p10 = pnand %p2300_p9, %p2294_p6 }
  0x56   : > { %2304 = shalt.err (!%p2301_p10)
}
  0x57   : > { %s2305_s17 = scalar_lea.vmem %s2607_s14, 1024  ;;  %s2432_s25 = smov [#allocation7]  }
  0x58   : > { %p2306_p1 = scmp.ne.s32.totalorder %s2607_s14, %s2305_s17  ;;  %s2310_s10 = sshll.u32 %s2432_s25, 4  ;;  %s2311_s10 = int_to_ptr.vmem [resolvable:$false] %s2310_s10 }
  0x59   : > { %s2312_s8 = scalar_lea.vmem %s2311_s10, 2048  ;;  %p2313_p2 = scmp.lt.s32.totalorder %s2607_s14, %s2311_s10 }
  0x5a   : > { %p2308_p4 = pnand %p2306_p1, %p2292_p3  ;;  %p2314_p5 = scmp.lt.s32.totalorder %s2312_s8, %s2305_s17 }
  0x5c   : > { %p2309_p0 = pneg %p2308_p4  ;;  %p2315_p11 = por %p2314_p5, %p2313_p2 }
  0x5e   : > { %p2316_p12 = pnand %p2315_p11, %p2309_p0 }
  0x60   : > { %2319 = shalt.err (!%p2316_p12)
}
  0x61   : > { %s2916_s12 = smov 128   ;;  %p2917_p3 = scmp.ne.s32.totalorder %s2910_s7, 0 }
  0x62   : > { %2177 = dma.hbm_to_vmem [thread:$0]  (!%p2915_p8), %s2605_s13, 1024, %s2607_s14, %s2609_s16, %s2916_s12, %s2916_s12, %s2431_s11  }
  0x63   : > { %233 = sbr.rel (%p2917_p3) target bundleno = 781 (0x30d), region = 36  ;;  %p2918_p6 = scmp.eq.s32.totalorder (!%p2917_p3), %s2493_s22, 0 }
  0x6a   : > { %2393 = dma.done.wait (%p2918_p6), [#allocation3], 256   ;;  %p2919_p13 = pmov %p2918_p6 }
  0x6b   : > { %p2920_p7 = pmov %p2918_p6 }
  0x6c   : > { %2395 = vsyncadd (%p2919_p13), [#allocation3], 4294967040 }
  0x6d   : > { %2397 = dma.done.wait (%p2920_p7), [#allocation6], 128   ;;  %p2921_p9 = pmov %p2918_p6 }
  0x6e   : > { %s243_s15 = sand.u32 1, %s2493_s22   ;;  %s2652_s11 = sand.u32 1, %s2418_s19  }
  0x6f   : > { %2399 = vsyncadd (%p2921_p9), [#allocation6], 4294967168  ;;  %s1780_s7 = sshll.u32 %s2652_s11, 6  ;;  %s244_s13 = scalar_lea.sflag [#allocation3], %s243_s15 }
  0x70   : > { %s247_s14 = scalar_lea.vmem [#allocation7], %s1780_s7  ;;  %p2922_p8 = scmp.ne.s32.totalorder %s2907_s29, 0 }
  0x72   : > { %2401 = dma.done.wait (%p2922_p8), %s244_s13, 1024  }
  0x73   : > { %2403 = vsyncadd (%p2922_p8), %s244_s13, 4294966272  ;;  %v312_v0 = vld [vmem:[#allocation2] sm:$0xff]  ;;  %v313_v1 = vld [vmem:[#allocation2 + $0x8] sm:$0xff]  ;;  %vm320_vm0 = vcmask 130048   ;;  %v2433_v40 = vmov 0.0   ;;  %vm2434_vm1 = vmmov 0  }
  0x74   : > { %v280_v2 = vld [vmem:[%s247_s14] sm:$0xff]  ;;  %v314_v3 = vpack.c.bf16 %v313_v1, %v312_v0  ;;  %v281_v4 = vld [vmem:[%s247_s14 + $0x8] sm:$0xff]  ;;  %v282_v5 = vld [vmem:[%s247_s14 + $0x10] sm:$0xff]  ;;  %1929 = vmatprep.subr.bf16.mxu1 %v2433_v40  ;;  %1931 = vmatprep.mubr.msk.bf16.mxu1 %vm2434_vm1, %v2433_v40  ;;  %s2435_s29 = smov 120   ;;  %s1781_s26 = sshll.u32 %s2652_s11, 5  ;;  %vm704_vm2 = vcmask 64512  }
  0x75   : > { %v283_v6 = vld [vmem:[%s247_s14 + $0x18] sm:$0xff]  ;;  %v288_v7 = vpack.c.bf16 %v281_v4, %v280_v2  ;;  %v284_v9 = vld [vmem:[%s247_s14 + $0x20] sm:$0xff]  ;;  %v285_v10 = vld [vmem:[%s247_s14 + $0x28] sm:$0xff]  ;;  %s271_s9 = scalar_lea.vmem [#allocation8], %s1781_s26  ;;  %s1834_s17 = sshll.u32 %s2493_s22, 9 }
  0x76   : > { %v289_v8 = vpack.c.bf16 %v283_v6, %v282_v5  ;;  %v286_v11 = vld [vmem:[%s247_s14 + $0x30] sm:$0xff]  ;;  %1899 = vmatprep.subr.bf16.mxu0 %v314_v3  ;;  %v290_v12 = vpack.c.bf16 %v285_v10, %v284_v9  ;;  %v287_v13 = vld [vmem:[%s247_s14 + $0x38] sm:$0xff]  ;;  %v315_v14 = vunpack.c.l.bf16 %v314_v3  ;;  %v316_v15 = vunpack.c.h.bf16 %v314_v3  ;;  %s1629_s28 = sshll.u32 %s271_s9, 4  ;;  %s2812_s8 = scalar_lea.hbm %s2898_s4, %s1834_s17  ;;  %s2807_s28 = int_to_ptr.vmem [resolvable:$true] %s1629_s28 }
  0x77   : > { %1900 = vmatpush3.bf16.msra.mxu0 %v314_v3  ;;  %v292_v16 = vunpack.c.l.bf16 %v288_v7  ;;  %v293_v17 = vunpack.c.h.bf16 %v288_v7  ;;  %v291_v22 = vpack.c.bf16 %v287_v13, %v286_v11  ;;  %v572_v41 = vld [vmem:[#allocation5] sm:$0xff]  ;;  %s1611_s12 = scalar_lea.sflag [#allocation4], %s2652_s11  ;;  %s2320_s15 = scalar_lea.vmem %s2807_s28, 512 }
  0x78   : > { %v294_v18 = vunpack.c.l.bf16 %v289_v8  ;;  %v295_v19 = vunpack.c.h.bf16 %v289_v8  ;;  %1909 = vmatprep.subr.bf16.mxu0 %v314_v3  ;;  %v296_v20 = vunpack.c.l.bf16 %v290_v12  ;;  %v297_v21 = vunpack.c.h.bf16 %v290_v12  ;;  %p2321_p10 = scmp.ne.s32.totalorder %s2807_s28, %s2320_s15  ;;  %p2923_p1 = scmp.ne.s32.totalorder %s2908_s30, 0 }
  0x79   : > { %v317_v23 = vsub.f32 %v312_v0, %v315_v14  ;;  %v300_v24 = vsub.f32 %v280_v2, %v292_v16  ;;  %v301_v25 = vsub.f32 %v281_v4, %v293_v17  ;;  %v298_v30 = vunpack.c.l.bf16 %v291_v22  ;;  %v1075_v14 = vld [vmem:[%s2896_s2] sm:$0xf]  ;;  %s2436_s7 = smov [#allocation8]  }
  0x7a   : > { %v302_v26 = vsub.f32 %v282_v5, %v294_v18  ;;  %v303_v27 = vsub.f32 %v283_v6, %v295_v19  ;;  %v304_v28 = vsub.f32 %v284_v9, %v296_v20  ;;  %v305_v29 = vsub.f32 %v285_v10, %v297_v21  ;;  %p2322_p4 = pnand %p2321_p10, %p2923_p1  ;;  %s2324_s13 = sshll.u32 %s2436_s7, 4  ;;  %s2325_s13 = int_to_ptr.vmem [resolvable:$false] %s2324_s13 }
  0x7b   : > { %v299_v31 = vunpack.c.h.bf16 %v291_v22  ;;  %v308_v32 = vpack.c.bf16 %v301_v25, %v300_v24  ;;  %v318_v34 = vsub.f32 %v313_v1, %v316_v15  ;;  %v306_v37 = vsub.f32 %v286_v11, %v298_v30  ;;  %s2326_s14 = scalar_lea.vmem %s2325_s13, 1024  ;;  %p2327_p2 = scmp.lt.s32.totalorder %s2807_s28, %s2325_s13 }
  0x7c   : > { %v309_v33 = vpack.c.bf16 %v303_v27, %v302_v26  ;;  %v310_v35 = vpack.c.bf16 %v305_v29, %v304_v28  ;;  %v2677_v42 = vpack.c.bf16 %v572_v41, %v572_v41  ;;  %v1076_v15 = vpack.c.bf16 %v1075_v14, %v1075_v14  ;;  %p2323_p0 = pneg %p2322_p4  ;;  %p2328_p5 = scmp.lt.s32.totalorder %s2326_s14, %s2320_s15 }
  0x7d   : > { %1901 = vmatprep.mubr.msk.bf16.mxu0 %vm320_vm0, %v308_v32  ;;  %v319_v36 = vpack.c.bf16 %v318_v34, %v317_v23  ;;  %v307_v38 = vsub.f32 %v287_v13, %v299_v31 }
  0x7e   : > { %1902 = vmatmul.mubr.msk.bf16.vlgmr.msra.gmra.mrb[0].mxu0 %vm320_vm0, %v309_v33  ;;  %v574_v43 = vunpack.c.l.bf16 %v2677_v42  ;;  %v1077_v16 = vunpack.c.l.bf16 %v1076_v15  ;;  %p2329_p11 = por %p2328_p5, %p2327_p2 }
  0x7f   : > { %1910 = vmatpush3.bf16.msra.mxu0 %v314_v3  ;;  %1905 = vmatprep.mubr.msk.bf16.mxu0 %vm320_vm0, %v310_v35  ;;  %v311_v39 = vpack.c.bf16 %v307_v38, %v306_v37 }
  0x80   : > { %1919 = vmatprep.subr.bf16.mxu0 %v319_v36  ;;  %v575_v46 = vsub.f32 %v572_v41, %v574_v43  ;;  %v1078_v17 = vsub.f32 %v1075_v14, %v1077_v16  ;;  %p2330_p12 = pnand %p2329_p11, %p2323_p0 }
  0x82   : > { %v2684_v53 = vpack.c.bf16 %v575_v46, %v575_v46  ;;  %v1079_v19 = vpack.c.bf16 %v1078_v17, %v1078_v17 }
  0x86   : > { %1906 = vmatmul.mubr.msk.bf16.gmra.mrb[4].mxu0 %vm320_vm0, %v311_v39 }
  0x87   : > { %1911 = vmatprep.mubr.msk.bf16.mxu0 %vm320_vm0, %v288_v7 }
  0x8e   : > { %1912 = vmatmul.mubr.msk.bf16.vlgmr.msra.gmra.mrb[0].mxu0 %vm320_vm0, %v289_v8 }
  0x8f   : > { %1920 = vmatpush3.bf16.msra.mxu0 %v319_v36  ;;  %1915 = vmatprep.mubr.msk.bf16.mxu0 %vm320_vm0, %v290_v12 }
  0x90   : > { %1965 = vmatprep.subr.bf16.mxu0 %v2433_v40 }
  0x96   : > { %1916 = vmatmul.mubr.msk.bf16.gmra.mrb[4].mxu0 %vm320_vm0, %v291_v22 }
  0x97   : > { %1921 = vmatprep.mubr.msk.bf16.mxu0 %vm320_vm0, %v288_v7 }
  0x9e   : > { %1922 = vmatmul.mubr.msk.bf16.vlgmr.msra.gmra.mrb[0].mxu0 %vm320_vm0, %v289_v8 }
  0x9f   : > { %1925 = vmatprep.mubr.msk.bf16.mxu0 %vm320_vm0, %v290_v12 }
  0xa6   : > { %1926 = vmatmul.mubr.msk.bf16.gmra.mrb[4].mxu0 %vm320_vm0, %v291_v22 }
  0xa7   : > { %1967 = vmatprep.mubr.msk.bf16.mxu0 %vm2434_vm1, %v2433_v40 }
 0x171   : > { %v1923_v44 = vpop.f32.mrb[0].mxu0 }
 0x172   : > { %v509_v45 = vpop.f32.mrb[1].mxu0 }
 0x173   : > { %v1924_v47 = vpop.f32.mrb[2].mxu0 }
 0x174   : > { %v2680_v48 = vpack.c.bf16 %v1924_v47, %v1923_v44  ;;  %v512_v49 = vpop.f32.mrb[3].mxu0 }
 0x175   : > { %v548_v50 = vpack.c.bf16 %v512_v49, %v509_v45 }
 0x176   : > { %v554_v51 = vunpack.c.l.bf16 %v2680_v48  ;;  %v555_v52 = vunpack.c.h.bf16 %v2680_v48 }
 0x177   : > { %v553_v54 = vunpack.c.h.bf16 %v548_v50  ;;  %1081 = vrot.lane.b32.xlu0 %v548_v50, %s2435_s29  ;;  %1930 = vmatpush3.bf16.msra.mxu1 %v548_v50  ;;  %v552_v55 = vunpack.c.l.bf16 %v548_v50 }
 0x178   : > { %v562_v56 = vsub.f32 %v1923_v44, %v554_v51  ;;  %v563_v57 = vsub.f32 %v1924_v47, %v555_v52  ;;  %1935 = vmatprep.subr.bf16.mxu1 %v2433_v40 }
 0x179   : > { %v561_v58 = vsub.f32 %v512_v49, %v553_v54  ;;  %v1927_v59 = vpop.f32.mrb[4].mxu0  ;;  %v560_v60 = vsub.f32 %v509_v45, %v552_v55 }
 0x17a   : > { %v569_v61 = vpack.c.bf16 %v563_v57, %v562_v56  ;;  %v525_v62 = vpop.f32.mrb[5].mxu0  ;;  %1932 = vmatmul.mubr.msk.bf16.vlgmr.msra.gmra.mrb[0].mxu1 %vm320_vm0, %v2684_v53 }
 0x17b   : > { %1218 = vrot.lane.b32.xlu0 %v2680_v48, %s2435_s29  ;;  %v1928_v63 = vpop.f32.mrb[6].mxu0  ;;  %1936 = vmatpush3.bf16.msra.mxu1 %v548_v50  ;;  %v568_v0 = vpack.c.bf16 %v561_v58, %v560_v60 }
 0x17c   : > { %v551_v1 = vpack.c.bf16 %v1928_v63, %v1927_v59  ;;  %v528_v2 = vpop.f32.mrb[7].mxu0  ;;  %1937 = vmatprep.mubr.msk.bf16.mxu1 %vm2434_vm1, %v2433_v40  ;;  %1941 = vmatprep.subr.bf16.mxu1 %v2433_v40 }
 0x17d   : > { %v550_v3 = vpack.c.bf16 %v528_v2, %v525_v62  ;;  %1171 = vrot.lane.b32.xlu1 %v568_v0, %s2435_s29 }
 0x17e   : > { %v558_v4 = vunpack.c.l.bf16 %v551_v1  ;;  %v559_v5 = vunpack.c.h.bf16 %v551_v1 }
 0x17f   : > { %v556_v6 = vunpack.c.l.bf16 %v550_v3  ;;  %v557_v7 = vunpack.c.h.bf16 %v550_v3  ;;  %1349 = vrot.lane.b32.xlu0 %v550_v3, %s2435_s29  ;;  %1966 = vmatpush3.bf16.msra.mxu0 %v550_v3 }
 0x180   : > { %v566_v8 = vsub.f32 %v1927_v59, %v558_v4  ;;  %v567_v9 = vsub.f32 %v1928_v63, %v559_v5  ;;  %1971 = vmatprep.subr.bf16.mxu0 %v2433_v40 }
 0x181   : > { %v564_v10 = vsub.f32 %v525_v62, %v556_v6  ;;  %v565_v11 = vsub.f32 %v528_v2, %v557_v7  ;;  %1302 = vrot.lane.b32.xlu1 %v569_v61, %s2435_s29 }
 0x182   : > { %v571_v12 = vpack.c.bf16 %v567_v9, %v566_v8  ;;  %1968 = vmatmul.mubr.msk.bf16.vlgmr.msra.gmra.mrb[8].mxu0 %vm320_vm0, %v2684_v53 }
 0x183   : > { %v570_v13 = vpack.c.bf16 %v565_v11, %v564_v10  ;;  %1972 = vmatpush3.bf16.msra.mxu0 %v550_v3  ;;  %1973 = vmatprep.mubr.msk.bf16.mxu0 %vm2434_vm1, %v2433_v40 }
 0x184   : > { %1977 = vmatprep.subr.bf16.mxu0 %v2433_v40 }
 0x185   : > { %1480 = vrot.lane.b32.xlu1 %v551_v1, %s2435_s29  ;;  %1433 = vrot.lane.b32.xlu0 %v570_v13, %s2435_s29 }
 0x186   : > { %1938 = vmatmul.mubr.msk.bf16.vlgmr.msra.gmra.mrb[0].mxu1 %vm320_vm0, %v2677_v42 }
 0x187   : > { %1942 = vmatpush3.bf16.msra.mxu1 %v568_v0  ;;  %1943 = vmatprep.mubr.msk.bf16.mxu1 %vm2434_vm1, %v2433_v40 }
 0x188   : > { %1947 = vmatprep.subr.bf16.mxu1 %v2433_v40 }
 0x189   : > { %1564 = vrot.lane.b32.xlu1 %v571_v12, %s2435_s29 }
 0x18e   : > { %1974 = vmatmul.mubr.msk.bf16.vlgmr.msra.gmra.mrb[8].mxu0 %vm320_vm0, %v2677_v42 }
 0x18f   : > { %1978 = vmatpush3.bf16.msra.mxu0 %v570_v13  ;;  %1979 = vmatprep.mubr.msk.bf16.mxu0 %vm2434_vm1, %v2433_v40 }
 0x190   : > { %2001 = vmatprep.subr.bf16.mxu0 %v2433_v40 }
 0x192   : > { %1944 = vmatmul.mubr.msk.bf16.vlgmr.msra.gmra.mrb[0].mxu1 %vm320_vm0, %v2677_v42 }
 0x193   : > { %1948 = vmatpush3.bf16.msra.mxu1 %v2680_v48  ;;  %1949 = vmatprep.mubr.msk.bf16.mxu1 %vm2434_vm1, %v2433_v40 }
 0x194   : > { %1953 = vmatprep.subr.bf16.mxu1 %v2433_v40 }
 0x19a   : > { %1950 = vmatmul.mubr.msk.bf16.vlgmr.msra.gmra.mrb[4].mxu1 %vm320_vm0, %v2684_v53  ;;  %1980 = vmatmul.mubr.msk.bf16.vlgmr.msra.gmra.mrb[8].mxu0 %vm320_vm0, %v2677_v42 }
 0x19b   : > { %1954 = vmatpush3.bf16.msra.mxu1 %v2680_v48  ;;  %1955 = vmatprep.mubr.msk.bf16.mxu1 %vm2434_vm1, %v2433_v40 }
 0x19c   : > { %1959 = vmatprep.subr.bf16.mxu1 %v2433_v40  ;;  %2003 = vmatprep.mubr.msk.bf16.mxu0 %vm2434_vm1, %v2433_v40 }
 0x1a6   : > { %1956 = vmatmul.mubr.msk.bf16.vlgmr.msra.gmra.mrb[4].mxu1 %vm320_vm0, %v2677_v42 }
 0x1a7   : > { %1960 = vmatpush3.bf16.msra.mxu1 %v569_v61  ;;  %1961 = vmatprep.mubr.msk.bf16.mxu1 %vm2434_vm1, %v2433_v40 }
 0x1a8   : > { %1983 = vmatprep.subr.bf16.mxu1 %v2433_v40 }
 0x1b2   : > { %1962 = vmatmul.mubr.msk.bf16.vlgmr.msra.gmra.mrb[4].mxu1 %vm320_vm0, %v2677_v42 }
 0x1b3   : > { %1984 = vmatpush3.bf16.msra.mxu1 %v551_v1  ;;  %1985 = vmatprep.mubr.msk.bf16.mxu1 %vm2434_vm1, %v2433_v40 }
 0x1b4   : > { %1989 = vmatprep.subr.bf16.mxu1 %v2433_v40 }
 0x1ba   : > { %1986 = vmatmul.mubr.msk.bf16.vlgmr.msra.gmra.mrb[8].mxu1 %vm320_vm0, %v2684_v53 }
 0x1bb   : > { %1990 = vmatpush3.bf16.msra.mxu1 %v551_v1  ;;  %1991 = vmatprep.mubr.msk.bf16.mxu1 %vm2434_vm1, %v2433_v40 }
 0x1bc   : > { %1995 = vmatprep.subr.bf16.mxu1 %v2433_v40 }
 0x1c6   : > { %1992 = vmatmul.mubr.msk.bf16.vlgmr.msra.gmra.mrb[8].mxu1 %vm320_vm0, %v2677_v42 }
 0x1c7   : > { %1996 = vmatpush3.bf16.msra.mxu1 %v571_v12  ;;  %1997 = vmatprep.mubr.msk.bf16.mxu1 %vm2434_vm1, %v2433_v40 }
 0x1c8   : > { %2019 = vmatprep.subr.bf16.mxu1 %v2433_v40 }
 0x1d2   : > { %1998 = vmatmul.mubr.msk.bf16.vlgmr.msra.gmra.mrb[8].mxu1 %vm320_vm0, %v2677_v42 }
 0x1d3   : > { %2021 = vmatprep.mubr.msk.bf16.mxu1 %vm2434_vm1, %v2433_v40 }
 0x1e9   : > { %v1082_v18 = vpop.permute.xlu0 %1081 }
 0x1ea   : > { %2002 = vmatpush3.bf16.msra.mxu0 %v1082_v18 }
 0x1eb   : > { %2007 = vmatprep.subr.bf16.mxu0 %v2433_v40 }
 0x1ed   : > { %v1219_v20 = vpop.permute.xlu0 %1218  ;;  %2004 = vmatmul.mubr.msk.bf16.vlgmr.msra.gmra.mrb[12].mxu0 %vm320_vm0, %v1079_v19 }
 0x1ee   : > { %2008 = vmatpush3.bf16.msra.mxu0 %v1082_v18  ;;  %2020 = vmatpush3.bf16.msra.mxu1 %v1219_v20 }
 0x1ef   : > { %2025 = vmatprep.subr.bf16.mxu1 %v2433_v40  ;;  %2009 = vmatprep.mubr.msk.bf16.mxu0 %vm2434_vm1, %v2433_v40  ;;  %v1172_v21 = vpop.permute.xlu1 %1171 }
 0x1f0   : > { %2013 = vmatprep.subr.bf16.mxu0 %v2433_v40 }
 0x1f1   : > { %2022 = vmatmul.mubr.msk.bf16.vlgmr.msra.gmra.mrb[12].mxu1 %vm320_vm0, %v1079_v19  ;;  %v1350_v23 = vpop.permute.xlu0 %1349 }
 0x1f2   : > { %2026 = vmatpush3.bf16.msra.mxu1 %v1219_v20  ;;  %2027 = vmatprep.mubr.msk.bf16.mxu1 %vm2434_vm1, %v2433_v40 }
 0x1f3   : > { %2031 = vmatprep.subr.bf16.mxu1 %v2433_v40  ;;  %v1303_v22 = vpop.permute.xlu1 %1302 }
 0x1f7   : > { %v1481_v24 = vpop.permute.xlu1 %1480  ;;  %v1434_v25 = vpop.permute.xlu0 %1433 }
 0x1f9   : > { %2010 = vmatmul.mubr.msk.bf16.vlgmr.msra.gmra.mrb[12].mxu0 %vm320_vm0, %v1076_v15 }
 0x1fa   : > { %2014 = vmatpush3.bf16.msra.mxu0 %v1172_v21  ;;  %2015 = vmatprep.mubr.msk.bf16.mxu0 %vm2434_vm1, %v2433_v40 }
 0x1fb   : > { %2037 = vmatprep.subr.bf16.mxu0 %v2433_v40  ;;  %v1565_v26 = vpop.permute.xlu1 %1564 }
 0x1fd   : > { %2028 = vmatmul.mubr.msk.bf16.vlgmr.msra.gmra.mrb[12].mxu1 %vm320_vm0, %v1076_v15 }
 0x1fe   : > { %2032 = vmatpush3.bf16.msra.mxu1 %v1303_v22  ;;  %2033 = vmatprep.mubr.msk.bf16.mxu1 %vm2434_vm1, %v2433_v40 }
 0x1ff   : > { %2055 = vmatprep.subr.bf16.mxu1 %v2433_v40 }
 0x205   : > { %2016 = vmatmul.mubr.msk.bf16.vlgmr.msra.gmra.mrb[12].mxu0 %vm320_vm0, %v1076_v15 }
 0x206   : > { %2038 = vmatpush3.bf16.msra.mxu0 %v1350_v23  ;;  %2039 = vmatprep.mubr.msk.bf16.mxu0 %vm2434_vm1, %v2433_v40 }
 0x207   : > { %2043 = vmatprep.subr.bf16.mxu0 %v2433_v40 }
 0x209   : > { %2034 = vmatmul.mubr.msk.bf16.vlgmr.msra.gmra.mrb[12].mxu1 %vm320_vm0, %v1076_v15 }
 0x20a   : > { %2056 = vmatpush3.bf16.msra.mxu1 %v1481_v24  ;;  %2057 = vmatprep.mubr.msk.bf16.mxu1 %vm2434_vm1, %v2433_v40 }
 0x20b   : > { %2061 = vmatprep.subr.bf16.mxu1 %v2433_v40 }
 0x20d   : > { %2040 = vmatmul.mubr.msk.bf16.vlgmr.msra.gmra.mrb[16].mxu0 %vm320_vm0, %v1079_v19 }
 0x20e   : > { %2044 = vmatpush3.bf16.msra.mxu0 %v1350_v23  ;;  %2045 = vmatprep.mubr.msk.bf16.mxu0 %vm2434_vm1, %v2433_v40 }
 0x20f   : > { %2049 = vmatprep.subr.bf16.mxu0 %v2433_v40 }
 0x211   : > { %2058 = vmatmul.mubr.msk.bf16.vlgmr.msra.gmra.mrb[16].mxu1 %vm320_vm0, %v1079_v19 }
 0x212   : > { %2062 = vmatpush3.bf16.msra.mxu1 %v1481_v24  ;;  %2063 = vmatprep.mubr.msk.bf16.mxu1 %vm2434_vm1, %v2433_v40 }
 0x213   : > { %2067 = vmatprep.subr.bf16.mxu1 %v2433_v40 }
 0x219   : > { %2046 = vmatmul.mubr.msk.bf16.vlgmr.msra.gmra.mrb[16].mxu0 %vm320_vm0, %v1076_v15 }
 0x21a   : > { %2050 = vmatpush3.bf16.msra.mxu0 %v1434_v25  ;;  %2051 = vmatprep.mubr.msk.bf16.mxu0 %vm2434_vm1, %v2433_v40 }
 0x21d   : > { %2064 = vmatmul.mubr.msk.bf16.vlgmr.msra.gmra.mrb[16].mxu1 %vm320_vm0, %v1076_v15 }
 0x21e   : > { %2068 = vmatpush3.bf16.msra.mxu1 %v1565_v26  ;;  %2069 = vmatprep.mubr.msk.bf16.mxu1 %vm2434_vm1, %v2433_v40 }
 0x225   : > { %2052 = vmatmul.mubr.msk.bf16.vlgmr.msra.gmra.mrb[16].mxu0 %vm320_vm0, %v1076_v15 }
 0x229   : > { %2070 = vmatmul.mubr.msk.bf16.vlgmr.msra.gmra.mrb[16].mxu1 %vm320_vm0, %v1076_v15 }
 0x265   : > { %v697_v27 = vpop.f32.mrb[0].mxu1 }
 0x266   : > { %705 = vst.msk [vmem:[%s271_s9] sm:$0xff] %vm704_vm2, %v697_v27  ;;  %v1945_v28 = vpop.f32.mrb[1].mxu1 }
 0x267   : > { %v700_v29 = vpop.f32.mrb[2].mxu1 }
 0x268   : > { %v1946_v30 = vpop.f32.mrb[3].mxu1 }
 0x26d   : > { %v943_v31 = vpop.f32.mrb[8].mxu0 }
 0x26e   : > { %1805 = vst.msk [vmem:[%s271_s9 + $0x10] sm:$0xff] %vm704_vm2, %v943_v31  ;;  %v1981_v32 = vpop.f32.mrb[9].mxu0 }
 0x26f   : > { %v946_v33 = vpop.f32.mrb[10].mxu0 }
 0x270   : > { %v1982_v34 = vpop.f32.mrb[11].mxu0 }
 0x285   : > { %v820_v35 = vpop.f32.mrb[4].mxu1 }
 0x286   : > { %1801 = vst.msk [vmem:[%s271_s9 + $0x8] sm:$0xff] %vm704_vm2, %v820_v35  ;;  %v1963_v36 = vpop.f32.mrb[5].mxu1 }
 0x287   : > { %v823_v37 = vpop.f32.mrb[6].mxu1 }
 0x288   : > { %v1964_v38 = vpop.f32.mrb[7].mxu1 }
 0x2a5   : > { %v1066_v39 = vpop.f32.mrb[8].mxu1 }
 0x2a6   : > { %1809 = vst.msk [vmem:[%s271_s9 + $0x18] sm:$0xff] %vm704_vm2, %v1066_v39  ;;  %v1999_v40 = vpop.f32.mrb[9].mxu1 }
 0x2a7   : > { %v1069_v41 = vpop.f32.mrb[10].mxu1 }
 0x2a8   : > { %2333 = shalt.err (!%p2330_p12)
}
 0x2a9   : > { %s2334_s29 = scalar_lea.hbm %s2812_s8, 512  ;;  %s2338_s26 = scalar_lea.hbm %s2898_s4, 1024 }
 0x2aa   : > { %p2335_p3 = scmp.ne.s32.totalorder %s2812_s8, %s2334_s29  ;;  %p2339_p7 = scmp.lt.u32.totalorder %s2812_s8, %s2898_s4 }
 0x2ab   : > { %p2340_p9 = scmp.lt.u32.totalorder %s2338_s26, %s2334_s29  ;;  %p2342_p10 = scmp.lt.u32.totalorder %s2334_s29, %s2812_s8 }
 0x2ac   : > { %p2336_p6 = pnand %p2335_p3, %p2923_p1 }
 0x2ad   : > { %p2341_p8 = por %p2340_p9, %p2339_p7 }
 0x2ae   : > { %p2337_p13 = pneg %p2336_p6 }
 0x2af   : > { %p2343_p4 = por %p2342_p10, %p2341_p8 }
 0x2b1   : > { %p2344_p0 = pnand %p2343_p4, %p2337_p13 }
 0x2b3   : > { %2347 = shalt.err (!%p2344_p0)
}
 0x2b4   : > { %s2437_s25 = smov 128   ;;  %s2438_s10 = smov 8   ;;  %v2000_v42 = vpop.f32.mrb[11].mxu1  ;;  %vm1215_vm3 = vcmask 27648  }
 0x2b5   : > { %2163 = dma.vmem_to_hbm [thread:$0]  (%p2923_p1), %s2807_s28, 512, %s2812_s8, %s1611_s12, %s2437_s25, %s2437_s25, %s2438_s10  }
 0x2b6   : > { %s1782_s15 = sshll.u32 %s2652_s11, 4  ;;  %s1835_s28 = sshll.u32 %s2493_s22, 8 }
 0x2b7   : > { %s278_s7 = scalar_lea.vmem [#allocation9], %s1782_s15  ;;  %s2849_s14 = scalar_lea.hbm %s2899_s5, %s1835_s28 }
 0x2b8   : > { %s1645_s13 = sshll.u32 %s278_s7, 4  ;;  %s1616_s22 = scalar_lea.sflag [#allocation10], %s2652_s11  ;;  %s2843_s13 = int_to_ptr.vmem [resolvable:$true] %s1645_s13 }
 0x2b9   : > { %s2348_s29 = scalar_lea.vmem %s2843_s13, 256  ;;  %s2439_s16 = smov [#allocation9]  }
 0x2ba   : > { %p2349_p2 = scmp.ne.s32.totalorder %s2843_s13, %s2348_s29  ;;  %s2352_s23 = sshll.u32 %s2439_s16, 4  ;;  %s2353_s23 = int_to_ptr.vmem [resolvable:$false] %s2352_s23 }
 0x2bb   : > { %s2354_s26 = scalar_lea.vmem %s2353_s23, 512  ;;  %p2355_p12 = scmp.lt.s32.totalorder %s2843_s13, %s2353_s23 }
 0x2bc   : > { %p2350_p5 = pnand %p2349_p2, %p2923_p1  ;;  %p2356_p3 = scmp.lt.s32.totalorder %s2354_s26, %s2348_s29 }
 0x2be   : > { %p2351_p11 = pneg %p2350_p5  ;;  %p2357_p6 = por %p2356_p3, %p2355_p12 }
 0x2c0   : > { %p2358_p13 = pnand %p2357_p6, %p2351_p11 }
 0x2d8   : > { %v1208_v43 = vpop.f32.mrb[12].mxu0 }
 0x2d9   : > { %1216 = vst.msk [vmem:[%s278_s7] sm:$0xf] %vm1215_vm3, %v1208_v43  ;;  %v2017_v44 = vpop.f32.mrb[13].mxu0 }
 0x2da   : > { %v1211_v45 = vpop.f32.mrb[14].mxu0 }
 0x2db   : > { %v2018_v46 = vpop.f32.mrb[15].mxu0 }
 0x2dc   : > { %v1339_v47 = vpop.f32.mrb[12].mxu1 }
 0x2dd   : > { %1816 = vst.msk [vmem:[%s278_s7 + $0x4] sm:$0xf] %vm1215_vm3, %v1339_v47  ;;  %v2035_v48 = vpop.f32.mrb[13].mxu1 }
 0x2de   : > { %v1342_v49 = vpop.f32.mrb[14].mxu1 }
 0x2df   : > { %v2036_v50 = vpop.f32.mrb[15].mxu1 }
 0x2f8   : > { %v1470_v51 = vpop.f32.mrb[16].mxu0 }
 0x2f9   : > { %1820 = vst.msk [vmem:[%s278_s7 + $0x8] sm:$0xf] %vm1215_vm3, %v1470_v51  ;;  %v2053_v52 = vpop.f32.mrb[17].mxu0 }
 0x2fa   : > { %v1473_v53 = vpop.f32.mrb[18].mxu0 }
 0x2fb   : > { %v2054_v54 = vpop.f32.mrb[19].mxu0 }
 0x2fc   : > { %v1601_v55 = vpop.f32.mrb[16].mxu1 }
 0x2fd   : > { %1824 = vst.msk [vmem:[%s278_s7 + $0xc] sm:$0xf] %vm1215_vm3, %v1601_v55  ;;  %v2071_v56 = vpop.f32.mrb[17].mxu1 }
 0x2fe   : > { %v1604_v57 = vpop.f32.mrb[18].mxu1 }
 0x2ff   : > { %2361 = shalt.err (!%p2358_p13)
}
 0x300   : > { %s2362_s9 = scalar_lea.hbm %s2849_s14, 256  ;;  %s2366_s10 = scalar_lea.hbm %s2899_s5, 512 }
 0x301   : > { %p2363_p7 = scmp.ne.s32.totalorder %s2849_s14, %s2362_s9  ;;  %p2367_p10 = scmp.lt.u32.totalorder %s2849_s14, %s2899_s5 }
 0x302   : > { %p2368_p4 = scmp.lt.u32.totalorder %s2366_s10, %s2362_s9  ;;  %p2370_p2 = scmp.lt.u32.totalorder %s2362_s9, %s2849_s14 }
 0x303   : > { %p2364_p9 = pnand %p2363_p7, %p2923_p1 }
 0x304   : > { %p2369_p0 = por %p2368_p4, %p2367_p10 }
 0x305   : > { %p2365_p8 = pneg %p2364_p9 }
 0x306   : > { %p2371_p5 = por %p2370_p2, %p2369_p0 }
 0x308   : > { %p2372_p11 = pnand %p2371_p5, %p2365_p8 }
 0x30a   : > { %2375 = shalt.err (!%p2372_p11)
}
 0x30b   : > { %s2440_s28 = smov 64   ;;  %s2441_s8 = smov 4   ;;  %v2072_v58 = vpop.f32.mrb[19].mxu1 }
 0x30c   : > { %2164 = dma.vmem_to_hbm [thread:$0]  (%p2923_p1), %s2843_s13, 256, %s2849_s14, %s1616_s22, %s2440_s28, %s2440_s28, %s2441_s8  }
 0x30d PF: > { %s1660_s12 = sand.u32 1, %s2414_s18   ;;  %p2924_p12 = scmp.ne.s32.totalorder %s2909_s6, 0 }
 0x30e   : > { %p2925_p3 = scmp.ge.s32.totalorder %s2426_s21, 2  ;;  %s1661_s29 = scalar_lea.sflag [#allocation4], %s1660_s12 }
 0x310   : > { %p2179_p6 = pnand %p2925_p3, %p2924_p12 }
 0x312   : > { %2405 = dma.done.wait (!%p2179_p6), %s1661_s29, 512  }
 0x313   : > { %2407 = vsyncadd (!%p2179_p6), %s1661_s29, 4294966784  ;;  %s1670_s16 = scalar_lea.sflag [#allocation10], %s1660_s12 }
 0x314   : > { %2409 = dma.done.wait (!%p2179_p6), %s1670_s16, 256  }
 0x315   : > { %2411 = vsyncadd (!%p2179_p6), %s1670_s16, 4294967040  ;;  %p21_p1 = scmp.ge.s32.totalorder %s2497_s24, 4   ;;  %s2926_s18 = smov %s2418_s19 }
 0x316   : > { %s2927_s19 = smov %s2422_s20  ;;  %s2928_s20 = smov %s2509_s27 }
 0x317   : > { %s2929_s21 = smov %s2497_s24  ;;  %23 = sbr.rel (!%p21_p1) target bundleno = 7 (0x7), region = 111 }
 0x31e   :  { %1675 = vsyncpa [#allocation3], 1 }
 0x31f   :  { %1677 = vsyncpa [#allocation3 + $0x1], 1 }
 0x320   :  { %1678 = vsyncpa [#allocation6], 1 }
 0x321   :  { %1679 = vsyncpa [#allocation4], 1 }
 0x322   :  { %1681 = vsyncpa [#allocation4 + $0x1], 1 }
 0x323   :  { %1682 = vsyncpa [#allocation10], 1 }
 0x324   :  { %1684 = vsyncpa [#allocation10 + $0x1], 1 }

</bundles_post_ra>
